<compile_context>
chip_gen: v7x
topology: tpu7x:2x2x1
jax: 0.10.0
libtpu: 0.0.40
codegen_flags: <defaults>
</compile_context>

<pallas_src>
import functools
import math

import jax
import jax.numpy as jnp
from jax.experimental import pallas as pl
from jax.experimental.pallas import tpu as pltpu

_MIB = 1024 * 1024
_LANE_CANDIDATES = (4096, 2048, 1024, 512, 256, 128)
_TARGET_BLOCK_BYTES = 8 * _MIB    # HBM-roofline plateau reached at 4-8 MiB blocks
_MIN_PIPELINE_BYTES = 2 * _MIB    # below this a single block is cheaper than pipelining
_MIN_GRID_STEPS = 4               # >=4 steps: in/out DMA overlap + both v7x TCs get work


def _round_up(x: int, m: int) -> int:
    return -(-x // m) * m


def _mul_const_kernel(x_ref, o_ref, *, constant):
    # `constant` is a compile-time literal closed over the kernel.
    o_ref[...] = x_ref[...] * jnp.asarray(constant, dtype=x_ref.dtype)


def _choose_block_rows(rows: int, cols: int, itemsize: int) -> int:
    # dtype-aware sublane alignment: 8 rows for 32-bit, 16 for 16-bit, 32 for 8-bit.
    sublane = 8 * max(1, 4 // itemsize)
    row_bytes = cols * itemsize
    total_bytes = rows * row_bytes

    if total_bytes <= _MIN_PIPELINE_BYTES or rows <= sublane:
        # Tiny tensor: one full-extent block (legal); pipelining isn't worth the overhead.
        return rows

    # Largest sublane-aligned row count under the ~8 MiB per-block budget.
    max_block_rows = max(sublane, (_TARGET_BLOCK_BYTES // row_bytes) // sublane * sublane)

    # Guarantee >= _MIN_GRID_STEPS near-equal blocks so the next input DMA overlaps
    # the previous output DMA and the "parallel" axis shards over v7x's 2 TCs.
    target = _round_up(pl.cdiv(rows, _MIN_GRID_STEPS), sublane)
    return max(sublane, min(max_block_rows, target))


def multiply_constant(x: jax.Array, constant) -> jax.Array:
    """y = x * constant, computed in a Pallas TPU kernel (elementwise)."""
    orig_shape = x.shape
    dtype = x.dtype
    n = math.prod(orig_shape) if orig_shape else 1

    # Normalize the constant to a concrete Python scalar so it can be baked in.
    try:
        c_val = constant.item() if hasattr(constant, "item") else constant
    except Exception:
        # Traced / non-concrete constant inside jit: a fused XLA multiply is a
        # single read+write HBM pass (roofline-optimal) and stays correct.
        return x * constant

    if n == 0:
        return x

    # Widest lane count (multiple of 128) that divides the element count ->
    # padding-free, contiguous, lane-dense 2-D slab.
    cols = next((w for w in _LANE_CANDIDATES if n % w == 0), None)
    if cols is None:
        # Irregular remainder: plain fused XLA multiply (avoid pad + slice copies).
        return x * jnp.asarray(c_val, dtype=dtype)

    rows = n // cols
    itemsize = jnp.dtype(dtype).itemsize

    block_rows = _choose_block_rows(rows, cols, itemsize)
    grid_rows = pl.cdiv(rows, block_rows)

    # VMEM budget: in + out, double-buffered = 4 blocks, plus headroom.
    block_bytes = block_rows * cols * itemsize
    vmem_limit = int(min(max(4 * block_bytes + 4 * _MIB, 16 * _MIB), 48 * _MIB))

    x2d = x.reshape(rows, cols)     # contiguous row-major view -> no data movement
    kernel = functools.partial(_mul_const_kernel, constant=c_val)

    out2d = pl.pallas_call(
        kernel,
        out_shape=jax.ShapeDtypeStruct((rows, cols), dtype),
        grid=(grid_rows,),
        in_specs=[pl.BlockSpec((block_rows, cols), lambda i: (i, 0))],
        out_specs=pl.BlockSpec((block_rows, cols), lambda i: (i, 0)),
        # Output overwrites the input buffer (full benefit when x is donated at
        # the caller's jit boundary; XLA copies defensively otherwise).
        input_output_aliases={0: 0},
        cost_estimate=pl.CostEstimate(
            flops=n, transcendentals=0, bytes_accessed=2 * n * itemsize),
        compiler_params=pltpu.CompilerParams(
            dimension_semantics=("parallel",),   # lets v7x shard the grid over its 2 TCs
            vmem_limit_bytes=vmem_limit,
        ),
    )(x2d)

    return out2d.reshape(orig_shape)


if __name__ == "__main__":
    key = jax.random.PRNGKey(0)
    # NCHW input implied by the module's usage: batch=2, channels=4, 16x16 spatial.
    x = jax.random.normal(key, (2, 4, 16, 16), dtype=jnp.float32)
    constant = 3.5  # module stores the constant at __init__

    y = multiply_constant(x, constant)
    y = jax.block_until_ready(y)

    ref = x * jnp.float32(constant)
    assert y.shape == x.shape and y.dtype == x.dtype
    assert jnp.allclose(y, ref, atol=1e-6, rtol=1e-6)

    # Multi-block path: 10 MiB f32 -> 4 balanced blocks (pipelined, parallel axis).
    x2 = jax.random.normal(jax.random.PRNGKey(1), (8, 16, 128, 160), dtype=jnp.float32)
    y2 = jax.block_until_ready(multiply_constant(x2, constant))
    assert jnp.allclose(y2, x2 * jnp.float32(constant), atol=1e-6, rtol=1e-6)

    # bf16 path: exercises dtype-aware (16-row) sublane alignment.
    x3 = jax.random.normal(jax.random.PRNGKey(2), (4, 16, 128, 256), dtype=jnp.bfloat16)
    y3 = jax.block_until_ready(multiply_constant(x3, constant))
    assert jnp.allclose(
        y3.astype(jnp.float32),
        x3.astype(jnp.float32) * jnp.float32(constant),
        atol=2e-2, rtol=2e-2)

    print("KERNEL_OK")
</pallas_src>

<mosaic_0001>
module attributes {stable_mosaic.version = 11 : i64} {
  func.func @_mul_const_kernel(%arg0: i32, %arg1: memref<1x2048xf32, #tpu.memory_space<vmem>>, %arg2: memref<1x2048xf32, #tpu.memory_space<vmem>>) attributes {dimension_semantics = [#tpu.dimension_semantics<parallel>], iteration_bounds = array<i64: 1>, scalar_prefetch = 0 : i64, scratch_operands = 0 : i64, tpu.core_type = #tpu.core_type<tc>, window_params = [{transform_indices = @transform_0, window_bounds = array<i64: 1, 2048>}, {transform_indices = @transform_1, window_bounds = array<i64: 1, 2048>}]} {
    %c0 = arith.constant 0 : index
    %c0_0 = arith.constant 0 : index
    %0 = vector.load %arg1[%c0, %c0_0] : memref<1x2048xf32, #tpu.memory_space<vmem>>, vector<1x2048xf32>
    %cst = arith.constant 3.500000e+00 : f32
    %1 = vector.broadcast %cst : f32 to vector<1x2048xf32>
    %2 = arith.mulf %0, %1 : vector<1x2048xf32>
    %c0_1 = arith.constant 0 : index
    %c0_2 = arith.constant 0 : index
    %3 = vector.load %arg2[%c0_1, %c0_2] : memref<1x2048xf32, #tpu.memory_space<vmem>>, vector<1x2048xf32>
    tpu.vector_store %arg2[%c0_1, %c0_2], %2 {strides = array<i32>} : memref<1x2048xf32, #tpu.memory_space<vmem>>, vector<1x2048xf32>,
    return
  }
  func.func @transform_0(%arg0: i32) -> (i32, i32) {
    %c0_i32 = arith.constant 0 : i32
    %c0_i32_0 = arith.constant 0 : i32
    return %arg0, %c0_i32 : i32, i32
  }
  func.func @transform_1(%arg0: i32) -> (i32, i32) {
    %c0_i32 = arith.constant 0 : i32
    %c0_i32_0 = arith.constant 0 : i32
    return %arg0, %c0_i32 : i32, i32
  }
}

</mosaic_0001>

<bundles_post_ra>
// kernel: tpu_custom_call.1
= control target key start
LH: loop header
LB: loop body
LE: loop exit
PB: predicated region body
PF: predicated region fallthrough
CT: control target
= control target key end

     0   :  { %6 = vsyncpa [#allocation3], 0  ;;  %s128_s0 = inlined_call_operand.hbm [shape: f32[1,2048], index: 0, kind: input, shape index: {}, may-alias: {0,1}]   ;;  %s129_s1 = inlined_call_operand.hbm [shape: f32[1,2048], index: 1, kind: output, shape index: {}, may-alias: {0,1}]  }
   0x1   :  { %7 = vsyncpa [#allocation4], 0  ;;  %s92_s6 = smov [#allocation2]   ;;  %s44_s10 = scalar_lea.hbm %s128_s0, 256 }
   0x2   :  { %s14_s7 = sshll.u32 %s92_s6, 4  ;;  %p45_p0 = scmp.ne.s32.totalorder %s128_s0, %s44_s10  ;;  %s15_s7 = int_to_ptr.vmem [resolvable:$true] %s14_s7 }
   0x3   :  { %p48_p1 = scmp.lt.u32.totalorder %s44_s10, %s128_s0 }
   0x5   :  { %p50_p2 = pnand %p48_p1, %p45_p0 }
   0x7   :  { %53 = shalt.err (!%p50_p2)
}
   0x8   :  { %s54_s15 = scalar_lea.vmem %s15_s7, 256  ;;  %p59_p4 = scmp.lt.s32.totalorder %s15_s7, %s15_s7 }
   0x9   :  { %p55_p3 = scmp.ne.s32.totalorder %s15_s7, %s54_s15  ;;  %p60_p5 = scmp.lt.s32.totalorder %s54_s15, %s54_s15 }
   0xb   :  { %p61_p6 = por %p60_p5, %p59_p4 }
   0xd   :  { %p62_p7 = pnand %p61_p6, %p55_p3 }
   0xf   :  { %65 = shalt.err (!%p62_p7)
}
  0x10   :  { %17 = dma.hbm_to_vmem [thread:$0]  %s128_s0, 256, %s15_s7, [#allocation3]  }
  0x11   :  { %88 = dma.done.wait [#allocation3], 256  }
  0x12   :  { %89 = vsyncadd [#allocation3], 4294967040  ;;  %s93_s18 = smov [#allocation5]   ;;  %v21_v0 = vld [vmem:[#allocation2] sm:$0xff]  ;;  %v22_v1 = vld [vmem:[#allocation2 + $0x8] sm:$0xff] }
  0x13   :  { %s33_s19 = sshll.u32 %s93_s18, 4  ;;  %v23_v2 = vmul.f32 3.5, %v21_v0  ;;  %v24_v3 = vmul.f32 3.5, %v22_v1  ;;  %s34_s19 = int_to_ptr.vmem [resolvable:$true] %s33_s19 }
  0x14   :  { %s66_s20 = scalar_lea.vmem %s34_s19, 256  ;;  %p71_p9 = scmp.lt.s32.totalorder %s34_s19, %s34_s19 }
  0x15   :  { %25 = vst [vmem:[#allocation5] sm:$0xff] %v23_v2  ;;  %26 = vst [vmem:[#allocation5 + $0x8] sm:$0xff] %v24_v3  ;;  %p67_p8 = scmp.ne.s32.totalorder %s34_s19, %s66_s20  ;;  %p72_p10 = scmp.lt.s32.totalorder %s66_s20, %s66_s20 }
  0x17   :  { %p73_p11 = por %p72_p10, %p71_p9 }
  0x19   :  { %p74_p12 = pnand %p73_p11, %p67_p8 }
  0x1b   :  { %77 = shalt.err (!%p74_p12)
}
  0x1c   :  { %s78_s22 = scalar_lea.hbm %s129_s1, 256 }
  0x1d   :  { %p79_p13 = scmp.ne.s32.totalorder %s129_s1, %s78_s22  ;;  %p82_p0 = scmp.lt.u32.totalorder %s78_s22, %s129_s1 }
  0x1f   :  { %p84_p1 = pnand %p82_p0, %p79_p13 }
  0x21   :  { %87 = shalt.err (!%p84_p1)
}
  0x22   :  { %36 = dma.vmem_to_hbm [thread:$0]  %s34_s19, 256, %s129_s1, [#allocation4]  }
  0x23   :  { %90 = dma.done.wait [#allocation4], 256  }
  0x24   :  { %91 = vsyncadd [#allocation4], 4294967040 }
  0x25   :  { %40 = vsyncpa [#allocation3], 1 }
  0x26   :  { %41 = vsyncpa [#allocation4], 1 }

</bundles_post_ra>
